<compile_context>
chip_gen: v5e
topology: v5e:2x2
jax: 0.10.0
libtpu: 0.0.40
codegen_flags: <defaults>
</compile_context>

<pallas_src>
import jax
import jax.numpy as jnp
from jax.experimental import pallas as pl
from jax.experimental.pallas import tpu as pltpu

_LANE = 128     # TPU lane width
_SUBLANE = 8    # f32 sublane tiling


def _round_up(n, m):
    return ((n + m - 1) // m) * m


def _pad2d(a, rows, cols):
    r, c = a.shape
    if r == rows and c == cols:
        return a
    return jnp.pad(a, ((0, rows - r), (0, cols - c)))


# --------------------------------------------------------------------------- #
# Kernel
# --------------------------------------------------------------------------- #
def _qnetwork_kernel(x_ref,
                     w1_ref, b1_ref,
                     w2_ref, b2_ref,
                     w3_ref, b3_ref,
                     w4_ref, b4_ref,
                     out_ref):
    """Fused forward: relu(relu(relu(x@W1+b1)@W2+b2)@W3+b3)@W4+b4.

    x arrives as f32 and is cast to the weight (MXU operand) dtype in VMEM.
    Accumulation and bias/ReLU epilogues are f32.  The final store is narrow:
    only the true action columns are written back to HBM.
    """
    cd = w1_ref.dtype                       # compute (MXU operand) dtype, bf16
    x = x_ref[...].astype(cd)               # in-VMEM cast (no extra HBM pass)

    h = jnp.dot(x, w1_ref[...], preferred_element_type=jnp.float32) + b1_ref[...]
    h = jnp.maximum(h, 0.0).astype(cd)

    h = jnp.dot(h, w2_ref[...], preferred_element_type=jnp.float32) + b2_ref[...]
    h = jnp.maximum(h, 0.0).astype(cd)

    h = jnp.dot(h, w3_ref[...], preferred_element_type=jnp.float32) + b3_ref[...]
    h = jnp.maximum(h, 0.0).astype(cd)

    q = jnp.dot(h, w4_ref[...], preferred_element_type=jnp.float32)
    a = out_ref.shape[-1]                   # true action dim (narrow output)
    out_ref[...] = (q[:, :a] + b4_ref[...]).astype(out_ref.dtype)


# --------------------------------------------------------------------------- #
# Parameter preparation (pad/cast once; idempotent)
# --------------------------------------------------------------------------- #
def prepare_qnetwork_params(params, compute_dtype=jnp.bfloat16):
    """Pad narrow feature dims to 128 lanes and cast MXU operands to bf16.

    Zero padding keeps the math identical: zero weight cols + zero bias give
    ReLU(0)=0, and zero weight rows in the next layer kill any contribution of
    the padded columns.  b4 is deliberately kept UNPADDED at (1, action_size)
    so the true action dim is always recoverable from the prepared dict.
    Idempotent and cheap when already prepared -- prepare once and reuse.
    """
    w1, w2, w3, w4 = (params[f"w{i}"] for i in range(1, 5))
    b1, b2, b3, b4 = (params[f"b{i}"] for i in range(1, 5))

    S = w1.shape[0]
    H1, H2, H3 = (_round_up(w.shape[1], _LANE) for w in (w1, w2, w3))
    A = b4.shape[1]
    AP = _round_up(A, _LANE)

    already = (w1.dtype == compute_dtype
               and w1.shape == (S, H1) and w2.shape == (H1, H2)
               and w3.shape == (H2, H3) and w4.shape == (H3, AP)
               and b1.shape == (1, H1) and b2.shape == (1, H2)
               and b3.shape == (1, H3) and b4.shape == (1, A))
    if already:
        return dict(params)

    def wpad(w, rows, cols):
        return _pad2d(w, rows, cols).astype(compute_dtype)

    def bpad(b, cols):
        return _pad2d(b.reshape(1, -1), 1, cols).astype(jnp.float32)

    return {
        "w1": wpad(w1, S, H1),  "b1": bpad(b1, H1),
        "w2": wpad(w2, H1, H2), "b2": bpad(b2, H2),
        "w3": wpad(w3, H2, H3), "b3": bpad(b3, H3),
        "w4": wpad(w4, H3, AP), "b4": b4.reshape(1, A).astype(jnp.float32),
    }


# --------------------------------------------------------------------------- #
# Tiling / VMEM heuristics
# --------------------------------------------------------------------------- #
def _vmem_capacity_bytes():
    """Physical VMEM per TensorCore; conservative 64 MiB if the query fails."""
    try:
        return int(pltpu.get_tpu_info().vmem_capacity_bytes)
    except Exception:
        return 64 * 1024 * 1024


def _choose_tiling(B, vmem_capacity_bytes):
    """Pick (padded_batch, batch_tile) with padded_batch % batch_tile == 0."""
    if B <= 1024:
        return B, B                 # single grid step; latency/launch bound anyway
    big_vmem = vmem_capacity_bytes >= 100 * 1024 * 1024   # v5e / v6e (128 MiB)
    if big_vmem:
        prefs = (4096, 2048, 1024, 512, 256)
        min_steps = 1
    else:
        # v7x: 64 MiB VMEM and 2 TensorCores share the "parallel" grid axis;
        # keep >= 2 steps per core so per-core I/O DMAs stay double-buffered.
        prefs = (1024, 512, 256)
        min_steps = 4
    for t in prefs:
        if B % t == 0 and B // t >= min_steps:
            return B, t
    # Ragged large batch (e.g. B=1032): pad up to a multiple of 512 rather than
    # degrading to many tiny grid steps; the wrapper slices the tail off.
    t = 512
    return _round_up(B, t), t


def _vmem_estimate(bt, S, H1, H2, H3, AP, A, weight_bytes):
    """VMEM usage estimate accounting for (8,128) sublane/lane padding."""
    def tile(rows, cols, itemsize, nbuf):
        return nbuf * _round_up(max(rows, 1), _SUBLANE) * _round_up(cols, _LANE) * itemsize

    est = 0
    # weights (2 pipeline buffers worst case; Buffered(1) only reduces this)
    est += tile(S, H1, weight_bytes, 2) + tile(H1, H2, weight_bytes, 2)
    est += tile(H2, H3, weight_bytes, 2) + tile(H3, AP, weight_bytes, 2)
    # biases (f32)
    for h in (H1, H2, H3, A):
        est += tile(1, h, 4, 2)
    # x / out tiles (f32), double-buffered
    est += tile(bt, S, 4, 2) + tile(bt, A, 4, 2)
    # live intermediates inside the kernel body (f32 + bf16 copies), generous
    est += 4 * tile(bt, max(H1, H2, H3, AP), 4, 1)
    # fixed headroom for compiler-internal scratch
    return est + 4 * 1024 * 1024


def _const_spec(shape, buffered):
    """BlockSpec for a grid-invariant (weight/bias) operand."""
    nd = len(shape)
    index_map = lambda i, _nd=nd: (0,) * _nd
    if buffered:
        # Grid-invariant operand: a single pipeline buffer is enough.
        return pl.BlockSpec(shape, index_map, pipeline_mode=pl.Buffered(1))
    return pl.BlockSpec(shape, index_map)


# --------------------------------------------------------------------------- #
# Forward pass
# --------------------------------------------------------------------------- #
def qnetwork_forward(state, params, *, batch_tile=None,
                     compute_dtype=jnp.bfloat16):
    """Fused QNetwork forward pass.

    state:  (B, state_size) float32 (kept f32 in HBM; cast to bf16 in VMEM)
    params: raw params from init_qnetwork_params() or (preferably) the output
            of prepare_qnetwork_params() -- prepare once and reuse.
    Returns (B, action_size) float32 action values.
    """
    p = prepare_qnetwork_params(params, compute_dtype=compute_dtype)
    w1, b1 = p["w1"], p["b1"]
    w2, b2 = p["w2"], p["b2"]
    w3, b3 = p["w3"], p["b3"]
    w4, b4 = p["w4"], p["b4"]

    B, S = state.shape
    if w1.shape[0] != S:
        raise ValueError(f"state feature dim {S} != w1 rows {w1.shape[0]}")
    H1, H2, H3, AP = w1.shape[1], w2.shape[1], w3.shape[1], w4.shape[1]
    A = b4.shape[1]                  # true action dim (b4 is kept unpadded)

    x = state if state.dtype == jnp.float32 else state.astype(jnp.float32)
    wbytes = jnp.dtype(compute_dtype).itemsize

    vmem_cap = _vmem_capacity_bytes()
    vmem_ceiling = max(vmem_cap - 16 * 1024 * 1024, 32 * 1024 * 1024)

    if batch_tile is None:
        Bp, batch_tile = _choose_tiling(B, vmem_cap)
        # Paranoia: shrink the tile if the padded-VMEM estimate doesn't fit.
        while (batch_tile >= 32 and batch_tile % 16 == 0 and
               _vmem_estimate(batch_tile, S, H1, H2, H3, AP, A, wbytes)
               > vmem_ceiling):
            batch_tile //= 2
    else:
        Bp = B
        assert B % batch_tile == 0, "batch_tile must evenly divide the batch"
        assert batch_tile == B or batch_tile % 8 == 0, (
            "batch_tile must be a multiple of 8 (16 preferred for bf16 packing)")

    if Bp != B:
        x = jnp.pad(x, ((0, Bp - B), (0, 0)))   # zero rows; sliced off below

    grid = (Bp // batch_tile,)
    est = _vmem_estimate(batch_tile, S, H1, H2, H3, AP, A, wbytes)
    vmem_limit = int(min(vmem_ceiling, max(est, 32 * 1024 * 1024)))

    consts = (w1, b1, w2, b2, w3, b3, w4, b4)

    def build(buffered_weights):
        in_specs = [pl.BlockSpec((batch_tile, S), lambda i: (i, 0))]   # x tile
        in_specs += [_const_spec(t.shape, buffered_weights) for t in consts]
        return pl.pallas_call(
            _qnetwork_kernel,
            out_shape=jax.ShapeDtypeStruct((Bp, A), jnp.float32),
            grid_spec=pltpu.PrefetchScalarGridSpec(
                num_scalar_prefetch=0,
                grid=grid,
                in_specs=in_specs,
                out_specs=pl.BlockSpec((batch_tile, A), lambda i: (i, 0)),
            ),
            compiler_params=pltpu.CompilerParams(
                dimension_semantics=("parallel",),
                vmem_limit_bytes=vmem_limit),
        )

    try:
        out = build(True)(x, *consts)
    except Exception:
        # This JAX build rejected pipeline_mode=pl.Buffered(1) on the
        # grid-invariant specs; fall back to plain (double-buffered) specs.
        out = build(False)(x, *consts)

    return out if Bp == B else out[:B]


# --------------------------------------------------------------------------- #
# Init + reference
# --------------------------------------------------------------------------- #
def init_qnetwork_params(key, state_size, action_size,
                         fc1_units=128, fc2_units=64, fc3_units=32):
    """Init matching PyTorch nn.Linear default (U[-1/sqrt(fan_in), +1/sqrt(fan_in)]).
    Weights stored transposed as (in, out)."""
    dims = [(state_size, fc1_units), (fc1_units, fc2_units),
            (fc2_units, fc3_units), (fc3_units, action_size)]
    params = {}
    for idx, (fan_in, fan_out) in enumerate(dims, start=1):
        key, kw, kb = jax.random.split(key, 3)
        bound = 1.0 / jnp.sqrt(jnp.float32(fan_in))
        params[f"w{idx}"] = jax.random.uniform(
            kw, (fan_in, fan_out), jnp.float32, minval=-bound, maxval=bound)
        params[f"b{idx}"] = jax.random.uniform(
            kb, (1, fan_out), jnp.float32, minval=-bound, maxval=bound)
    return params


def qnetwork_reference(state, params, compute_dtype=jnp.float32):
    """Plain-JAX reference on raw params.  With compute_dtype=bf16 it mirrors
    the kernel's bf16-operand / f32-accumulation arithmetic."""
    cd = compute_dtype
    h = state.astype(cd)
    for i in range(1, 5):
        w = params[f"w{i}"].astype(cd)
        b = params[f"b{i}"]
        h = jnp.dot(h, w, preferred_element_type=jnp.float32) + b
        if i < 4:
            h = jnp.maximum(h, 0.0).astype(cd)
    return h


# --------------------------------------------------------------------------- #
# Self-test
# --------------------------------------------------------------------------- #
if __name__ == "__main__":
    key = jax.random.PRNGKey(0)
    batch = 2
    state_size = 8
    action_size = 4

    k_params, k_state, k_state2 = jax.random.split(key, 3)
    params = init_qnetwork_params(k_params, state_size, action_size)
    prepared = prepare_qnetwork_params(params)      # pad/cast once, reuse
    state = jax.random.normal(k_state, (batch, state_size), jnp.float32)

    out = qnetwork_forward(state, prepared)
    out = jax.block_until_ready(out)
    assert out.shape == (batch, action_size)

    # Matches a bf16-operand / f32-accumulation reference tightly...
    ref_bf16 = qnetwork_reference(state, params, compute_dtype=jnp.bfloat16)
    assert jnp.allclose(out, ref_bf16, atol=2e-3, rtol=2e-3), \
        "mismatch vs bf16-matched reference"
    # ...and the full-f32 reference loosely (bf16 MXU operands).
    ref_f32 = qnetwork_reference(state, params, compute_dtype=jnp.float32)
    assert jnp.allclose(out, ref_f32, atol=5e-2, rtol=5e-2), \
        "mismatch vs f32 reference"

    # Also exercise the multi-step tiled grid path (small, cheap).
    state2 = jax.random.normal(k_state2, (48, state_size), jnp.float32)
    out2 = jax.block_until_ready(
        qnetwork_forward(state2, prepared, batch_tile=16))
    ref2 = qnetwork_reference(state2, params, compute_dtype=jnp.bfloat16)
    assert out2.shape == (48, action_size)
    assert jnp.allclose(out2, ref2, atol=2e-3, rtol=2e-3), \
        "mismatch vs bf16-matched reference (tiled path)"

    print("KERNEL_OK")
</pallas_src>

<mosaic_0001>
module attributes {stable_mosaic.version = 11 : i64} {
  func.func @_qnetwork_kernel(%arg0: i32, %arg1: memref<2x8xf32, #tpu.memory_space<vmem>>, %arg2: memref<8x128xbf16, #tpu.memory_space<vmem>>, %arg3: memref<1x128xf32, #tpu.memory_space<vmem>>, %arg4: memref<128x128xbf16, #tpu.memory_space<vmem>>, %arg5: memref<1x128xf32, #tpu.memory_space<vmem>>, %arg6: memref<128x128xbf16, #tpu.memory_space<vmem>>, %arg7: memref<1x128xf32, #tpu.memory_space<vmem>>, %arg8: memref<128x128xbf16, #tpu.memory_space<vmem>>, %arg9: memref<1x4xf32, #tpu.memory_space<vmem>>, %arg10: memref<2x4xf32, #tpu.memory_space<vmem>>) attributes {dimension_semantics = [#tpu.dimension_semantics<parallel>], iteration_bounds = array<i64: 1>, scalar_prefetch = 0 : i64, scratch_operands = 0 : i64, tpu.core_type = #tpu.core_type<tc>, window_params = [{transform_indices = @transform_0, window_bounds = array<i64: 2, 8>}, {pipeline_mode = #tpu.pipeline_mode<synchronous>, transform_indices = @transform_1, window_bounds = array<i64: 8, 128>}, {pipeline_mode = #tpu.pipeline_mode<synchronous>, transform_indices = @transform_2, window_bounds = array<i64: 1, 128>}, {pipeline_mode = #tpu.pipeline_mode<synchronous>, transform_indices = @transform_3, window_bounds = array<i64: 128, 128>}, {pipeline_mode = #tpu.pipeline_mode<synchronous>, transform_indices = @transform_4, window_bounds = array<i64: 1, 128>}, {pipeline_mode = #tpu.pipeline_mode<synchronous>, transform_indices = @transform_5, window_bounds = array<i64: 128, 128>}, {pipeline_mode = #tpu.pipeline_mode<synchronous>, transform_indices = @transform_6, window_bounds = array<i64: 1, 128>}, {pipeline_mode = #tpu.pipeline_mode<synchronous>, transform_indices = @transform_7, window_bounds = array<i64: 128, 128>}, {pipeline_mode = #tpu.pipeline_mode<synchronous>, transform_indices = @transform_8, window_bounds = array<i64: 1, 4>}, {transform_indices = @transform_9, window_bounds = array<i64: 2, 4>}]} {
    %c0 = arith.constant 0 : index
    %c0_0 = arith.constant 0 : index
    %0 = vector.load %arg1[%c0, %c0_0] : memref<2x8xf32, #tpu.memory_space<vmem>>, vector<2x8xf32>
    %1 = arith.truncf %0 : vector<2x8xf32> to vector<2x8xbf16>
    %c0_1 = arith.constant 0 : index
    %c0_2 = arith.constant 0 : index
    %2 = vector.load %arg2[%c0_1, %c0_2] : memref<8x128xbf16, #tpu.memory_space<vmem>>, vector<8x128xbf16>
    %cst = arith.constant dense<0.000000e+00> : vector<2x128xf32>
    %3 = tpu.matmul %1, %2, %cst {dimension_numbers = #tpu.dot_dimension_numbers<[1], [0], [0], [1], [0, 0, 1, 1], [], []>} : vector<2x8xbf16>, vector<8x128xbf16>, vector<2x128xf32> -> vector<2x128xf32>
    %c0_3 = arith.constant 0 : index
    %c0_4 = arith.constant 0 : index
    %4 = vector.load %arg3[%c0_3, %c0_4] : memref<1x128xf32, #tpu.memory_space<vmem>>, vector<1x128xf32>
    %5 = vector.broadcast %4 : vector<1x128xf32> to vector<2x128xf32>
    %6 = arith.addf %3, %5 : vector<2x128xf32>
    %cst_5 = arith.constant 0.000000e+00 : f32
    %7 = vector.broadcast %cst_5 : f32 to vector<2x128xf32>
    %8 = arith.maximumf %6, %7 : vector<2x128xf32>
    %9 = arith.truncf %8 : vector<2x128xf32> to vector<2x128xbf16>
    %c0_6 = arith.constant 0 : index
    %c0_7 = arith.constant 0 : index
    %10 = vector.load %arg4[%c0_6, %c0_7] : memref<128x128xbf16, #tpu.memory_space<vmem>>, vector<128x128xbf16>
    %cst_8 = arith.constant dense<0.000000e+00> : vector<2x128xf32>
    %11 = tpu.matmul %9, %10, %cst_8 {dimension_numbers = #tpu.dot_dimension_numbers<[1], [0], [0], [1], [0, 0, 1, 1], [], []>} : vector<2x128xbf16>, vector<128x128xbf16>, vector<2x128xf32> -> vector<2x128xf32>
    %c0_9 = arith.constant 0 : index
    %c0_10 = arith.constant 0 : index
    %12 = vector.load %arg5[%c0_9, %c0_10] : memref<1x128xf32, #tpu.memory_space<vmem>>, vector<1x128xf32>
    %13 = vector.broadcast %12 : vector<1x128xf32> to vector<2x128xf32>
    %14 = arith.addf %11, %13 : vector<2x128xf32>
    %cst_11 = arith.constant 0.000000e+00 : f32
    %15 = vector.broadcast %cst_11 : f32 to vector<2x128xf32>
    %16 = arith.maximumf %14, %15 : vector<2x128xf32>
    %17 = arith.truncf %16 : vector<2x128xf32> to vector<2x128xbf16>
    %c0_12 = arith.constant 0 : index
    %c0_13 = arith.constant 0 : index
    %18 = vector.load %arg6[%c0_12, %c0_13] : memref<128x128xbf16, #tpu.memory_space<vmem>>, vector<128x128xbf16>
    %cst_14 = arith.constant dense<0.000000e+00> : vector<2x128xf32>
    %19 = tpu.matmul %17, %18, %cst_14 {dimension_numbers = #tpu.dot_dimension_numbers<[1], [0], [0], [1], [0, 0, 1, 1], [], []>} : vector<2x128xbf16>, vector<128x128xbf16>, vector<2x128xf32> -> vector<2x128xf32>
    %c0_15 = arith.constant 0 : index
    %c0_16 = arith.constant 0 : index
    %20 = vector.load %arg7[%c0_15, %c0_16] : memref<1x128xf32, #tpu.memory_space<vmem>>, vector<1x128xf32>
    %21 = vector.broadcast %20 : vector<1x128xf32> to vector<2x128xf32>
    %22 = arith.addf %19, %21 : vector<2x128xf32>
    %cst_17 = arith.constant 0.000000e+00 : f32
    %23 = vector.broadcast %cst_17 : f32 to vector<2x128xf32>
    %24 = arith.maximumf %22, %23 : vector<2x128xf32>
    %25 = arith.truncf %24 : vector<2x128xf32> to vector<2x128xbf16>
    %c0_18 = arith.constant 0 : index
    %c0_19 = arith.constant 0 : index
    %26 = vector.load %arg8[%c0_18, %c0_19] : memref<128x128xbf16, #tpu.memory_space<vmem>>, vector<128x128xbf16>
    %cst_20 = arith.constant dense<0.000000e+00> : vector<2x128xf32>
    %27 = tpu.matmul %25, %26, %cst_20 {dimension_numbers = #tpu.dot_dimension_numbers<[1], [0], [0], [1], [0, 0, 1, 1], [], []>} : vector<2x128xbf16>, vector<128x128xbf16>, vector<2x128xf32> -> vector<2x128xf32>
    %28 = vector.extract_strided_slice %27 {offsets = [0, 0], sizes = [2, 4], strides = [1, 1]} : vector<2x128xf32> to vector<2x4xf32>
    %c0_21 = arith.constant 0 : index
    %c0_22 = arith.constant 0 : index
    %29 = vector.load %arg9[%c0_21, %c0_22] : memref<1x4xf32, #tpu.memory_space<vmem>>, vector<1x4xf32>
    %30 = vector.broadcast %29 : vector<1x4xf32> to vector<2x4xf32>
    %31 = arith.addf %28, %30 : vector<2x4xf32>
    %c0_23 = arith.constant 0 : index
    %c0_24 = arith.constant 0 : index
    %32 = vector.load %arg10[%c0_23, %c0_24] : memref<2x4xf32, #tpu.memory_space<vmem>>, vector<2x4xf32>
    tpu.vector_store %arg10[%c0_23, %c0_24], %31 {strides = array<i32>} : memref<2x4xf32, #tpu.memory_space<vmem>>, vector<2x4xf32>,
    return
  }
  func.func @transform_0(%arg0: i32) -> (i32, i32) {
    %c0_i32 = arith.constant 0 : i32
    %c0_i32_0 = arith.constant 0 : i32
    return %arg0, %c0_i32 : i32, i32
  }
  func.func @transform_1(%arg0: i32) -> (i32, i32) {
    %c0_i32 = arith.constant 0 : i32
    %c0_i32_0 = arith.constant 0 : i32
    %c0_i32_1 = arith.constant 0 : i32
    return %c0_i32, %c0_i32_0 : i32, i32
  }
  func.func @transform_2(%arg0: i32) -> (i32, i32) {
    %c0_i32 = arith.constant 0 : i32
    %c0_i32_0 = arith.constant 0 : i32
    %c0_i32_1 = arith.constant 0 : i32
    return %c0_i32, %c0_i32_0 : i32, i32
  }
  func.func @transform_3(%arg0: i32) -> (i32, i32) {
    %c0_i32 = arith.constant 0 : i32
    %c0_i32_0 = arith.constant 0 : i32
    %c0_i32_1 = arith.constant 0 : i32
    return %c0_i32, %c0_i32_0 : i32, i32
  }
  func.func @transform_4(%arg0: i32) -> (i32, i32) {
    %c0_i32 = arith.constant 0 : i32
    %c0_i32_0 = arith.constant 0 : i32
    %c0_i32_1 = arith.constant 0 : i32
    return %c0_i32, %c0_i32_0 : i32, i32
  }
  func.func @transform_5(%arg0: i32) -> (i32, i32) {
    %c0_i32 = arith.constant 0 : i32
    %c0_i32_0 = arith.constant 0 : i32
    %c0_i32_1 = arith.constant 0 : i32
    return %c0_i32, %c0_i32_0 : i32, i32
  }
  func.func @transform_6(%arg0: i32) -> (i32, i32) {
    %c0_i32 = arith.constant 0 : i32
    %c0_i32_0 = arith.constant 0 : i32
    %c0_i32_1 = arith.constant 0 : i32
    return %c0_i32, %c0_i32_0 : i32, i32
  }
  func.func @transform_7(%arg0: i32) -> (i32, i32) {
    %c0_i32 = arith.constant 0 : i32
    %c0_i32_0 = arith.constant 0 : i32
    %c0_i32_1 = arith.constant 0 : i32
    return %c0_i32, %c0_i32_0 : i32, i32
  }
  func.func @transform_8(%arg0: i32) -> (i32, i32) {
    %c0_i32 = arith.constant 0 : i32
    %c0_i32_0 = arith.constant 0 : i32
    %c0_i32_1 = arith.constant 0 : i32
    return %c0_i32, %c0_i32_0 : i32, i32
  }
  func.func @transform_9(%arg0: i32) -> (i32, i32) {
    %c0_i32 = arith.constant 0 : i32
    %c0_i32_0 = arith.constant 0 : i32
    return %arg0, %c0_i32 : i32, i32
  }
}

module attributes {stable_mosaic.version = 11 : i64} {
  func.func @_qnetwork_kernel(%arg0: i32, %arg1: memref<2x8xf32, #tpu.memory_space<vmem>>, %arg2: memref<8x128xbf16, #tpu.memory_space<vmem>>, %arg3: memref<1x128xf32, #tpu.memory_space<vmem>>, %arg4: memref<128x128xbf16, #tpu.memory_space<vmem>>, %arg5: memref<1x128xf32, #tpu.memory_space<vmem>>, %arg6: memref<128x128xbf16, #tpu.memory_space<vmem>>, %arg7: memref<1x128xf32, #tpu.memory_space<vmem>>, %arg8: memref<128x128xbf16, #tpu.memory_space<vmem>>, %arg9: memref<1x4xf32, #tpu.memory_space<vmem>>, %arg10: memref<2x4xf32, #tpu.memory_space<vmem>>) attributes {dimension_semantics = [#tpu.dimension_semantics<parallel>], iteration_bounds = array<i64: 1>, scalar_prefetch = 0 : i64, scratch_operands = 0 : i64, tpu.core_type = #tpu.core_type<tc>, window_params = [{transform_indices = @transform_0, window_bounds = array<i64: 2, 8>}, {pipeline_mode = #tpu.pipeline_mode<synchronous>, transform_indices = @transform_1, window_bounds = array<i64: 8, 128>}, {pipeline_mode = #tpu.pipeline_mode<synchronous>, transform_indices = @transform_2, window_bounds = array<i64: 1, 128>}, {pipeline_mode = #tpu.pipeline_mode<synchronous>, transform_indices = @transform_3, window_bounds = array<i64: 128, 128>}, {pipeline_mode = #tpu.pipeline_mode<synchronous>, transform_indices = @transform_4, window_bounds = array<i64: 1, 128>}, {pipeline_mode = #tpu.pipeline_mode<synchronous>, transform_indices = @transform_5, window_bounds = array<i64: 128, 128>}, {pipeline_mode = #tpu.pipeline_mode<synchronous>, transform_indices = @transform_6, window_bounds = array<i64: 1, 128>}, {pipeline_mode = #tpu.pipeline_mode<synchronous>, transform_indices = @transform_7, window_bounds = array<i64: 128, 128>}, {pipeline_mode = #tpu.pipeline_mode<synchronous>, transform_indices = @transform_8, window_bounds = array<i64: 1, 4>}, {transform_indices = @transform_9, window_bounds = array<i64: 2, 4>}]} {
    %c0 = arith.constant 0 : index
    %c0_0 = arith.constant 0 : index
    %0 = vector.load %arg1[%c0, %c0_0] : memref<2x8xf32, #tpu.memory_space<vmem>>, vector<2x8xf32>
    %1 = arith.truncf %0 : vector<2x8xf32> to vector<2x8xbf16>
    %c0_1 = arith.constant 0 : index
    %c0_2 = arith.constant 0 : index
    %2 = vector.load %arg2[%c0_1, %c0_2] : memref<8x128xbf16, #tpu.memory_space<vmem>>, vector<8x128xbf16>
    %cst = arith.constant dense<0.000000e+00> : vector<2x128xf32>
    %3 = tpu.matmul %1, %2, %cst {dimension_numbers = #tpu.dot_dimension_numbers<[1], [0], [0], [1], [0, 0, 1, 1], [], []>} : vector<2x8xbf16>, vector<8x128xbf16>, vector<2x128xf32> -> vector<2x128xf32>
    %c0_3 = arith.constant 0 : index
    %c0_4 = arith.constant 0 : index
    %4 = vector.load %arg3[%c0_3, %c0_4] : memref<1x128xf32, #tpu.memory_space<vmem>>, vector<1x128xf32>
    %5 = vector.broadcast %4 : vector<1x128xf32> to vector<2x128xf32>
    %6 = arith.addf %3, %5 : vector<2x128xf32>
    %cst_5 = arith.constant 0.000000e+00 : f32
    %7 = vector.broadcast %cst_5 : f32 to vector<2x128xf32>
    %8 = arith.maximumf %6, %7 : vector<2x128xf32>
    %9 = arith.truncf %8 : vector<2x128xf32> to vector<2x128xbf16>
    %c0_6 = arith.constant 0 : index
    %c0_7 = arith.constant 0 : index
    %10 = vector.load %arg4[%c0_6, %c0_7] : memref<128x128xbf16, #tpu.memory_space<vmem>>, vector<128x128xbf16>
    %cst_8 = arith.constant dense<0.000000e+00> : vector<2x128xf32>
    %11 = tpu.matmul %9, %10, %cst_8 {dimension_numbers = #tpu.dot_dimension_numbers<[1], [0], [0], [1], [0, 0, 1, 1], [], []>} : vector<2x128xbf16>, vector<128x128xbf16>, vector<2x128xf32> -> vector<2x128xf32>
    %c0_9 = arith.constant 0 : index
    %c0_10 = arith.constant 0 : index
    %12 = vector.load %arg5[%c0_9, %c0_10] : memref<1x128xf32, #tpu.memory_space<vmem>>, vector<1x128xf32>
    %13 = vector.broadcast %12 : vector<1x128xf32> to vector<2x128xf32>
    %14 = arith.addf %11, %13 : vector<2x128xf32>
    %cst_11 = arith.constant 0.000000e+00 : f32
    %15 = vector.broadcast %cst_11 : f32 to vector<2x128xf32>
    %16 = arith.maximumf %14, %15 : vector<2x128xf32>
    %17 = arith.truncf %16 : vector<2x128xf32> to vector<2x128xbf16>
    %c0_12 = arith.constant 0 : index
    %c0_13 = arith.constant 0 : index
    %18 = vector.load %arg6[%c0_12, %c0_13] : memref<128x128xbf16, #tpu.memory_space<vmem>>, vector<128x128xbf16>
    %cst_14 = arith.constant dense<0.000000e+00> : vector<2x128xf32>
    %19 = tpu.matmul %17, %18, %cst_14 {dimension_numbers = #tpu.dot_dimension_numbers<[1], [0], [0], [1], [0, 0, 1, 1], [], []>} : vector<2x128xbf16>, vector<128x128xbf16>, vector<2x128xf32> -> vector<2x128xf32>
    %c0_15 = arith.constant 0 : index
    %c0_16 = arith.constant 0 : index
    %20 = vector.load %arg7[%c0_15, %c0_16] : memref<1x128xf32, #tpu.memory_space<vmem>>, vector<1x128xf32>
    %21 = vector.broadcast %20 : vector<1x128xf32> to vector<2x128xf32>
    %22 = arith.addf %19, %21 : vector<2x128xf32>
    %cst_17 = arith.constant 0.000000e+00 : f32
    %23 = vector.broadcast %cst_17 : f32 to vector<2x128xf32>
    %24 = arith.maximumf %22, %23 : vector<2x128xf32>
    %25 = arith.truncf %24 : vector<2x128xf32> to vector<2x128xbf16>
    %c0_18 = arith.constant 0 : index
    %c0_19 = arith.constant 0 : index
    %26 = vector.load %arg8[%c0_18, %c0_19] : memref<128x128xbf16, #tpu.memory_space<vmem>>, vector<128x128xbf16>
    %cst_20 = arith.constant dense<0.000000e+00> : vector<2x128xf32>
    %27 = tpu.matmul %25, %26, %cst_20 {dimension_numbers = #tpu.dot_dimension_numbers<[1], [0], [0], [1], [0, 0, 1, 1], [], []>} : vector<2x128xbf16>, vector<128x128xbf16>, vector<2x128xf32> -> vector<2x128xf32>
    %28 = vector.extract_strided_slice %27 {offsets = [0, 0], sizes = [2, 4], strides = [1, 1]} : vector<2x128xf32> to vector<2x4xf32>
    %c0_21 = arith.constant 0 : index
    %c0_22 = arith.constant 0 : index
    %29 = vector.load %arg9[%c0_21, %c0_22] : memref<1x4xf32, #tpu.memory_space<vmem>>, vector<1x4xf32>
    %30 = vector.broadcast %29 : vector<1x4xf32> to vector<2x4xf32>
    %31 = arith.addf %28, %30 : vector<2x4xf32>
    %c0_23 = arith.constant 0 : index
    %c0_24 = arith.constant 0 : index
    %32 = vector.load %arg10[%c0_23, %c0_24] : memref<2x4xf32, #tpu.memory_space<vmem>>, vector<2x4xf32>
    tpu.vector_store %arg10[%c0_23, %c0_24], %31 {strides = array<i32>} : memref<2x4xf32, #tpu.memory_space<vmem>>, vector<2x4xf32>,
    return
  }
  func.func @transform_0(%arg0: i32) -> (i32, i32) {
    %c0_i32 = arith.constant 0 : i32
    %c0_i32_0 = arith.constant 0 : i32
    return %arg0, %c0_i32 : i32, i32
  }
  func.func @transform_1(%arg0: i32) -> (i32, i32) {
    %c0_i32 = arith.constant 0 : i32
    %c0_i32_0 = arith.constant 0 : i32
    %c0_i32_1 = arith.constant 0 : i32
    return %c0_i32, %c0_i32_0 : i32, i32
  }
  func.func @transform_2(%arg0: i32) -> (i32, i32) {
    %c0_i32 = arith.constant 0 : i32
    %c0_i32_0 = arith.constant 0 : i32
    %c0_i32_1 = arith.constant 0 : i32
    return %c0_i32, %c0_i32_0 : i32, i32
  }
  func.func @transform_3(%arg0: i32) -> (i32, i32) {
    %c0_i32 = arith.constant 0 : i32
    %c0_i32_0 = arith.constant 0 : i32
    %c0_i32_1 = arith.constant 0 : i32
    return %c0_i32, %c0_i32_0 : i32, i32
  }
  func.func @transform_4(%arg0: i32) -> (i32, i32) {
    %c0_i32 = arith.constant 0 : i32
    %c0_i32_0 = arith.constant 0 : i32
    %c0_i32_1 = arith.constant 0 : i32
    return %c0_i32, %c0_i32_0 : i32, i32
  }
  func.func @transform_5(%arg0: i32) -> (i32, i32) {
    %c0_i32 = arith.constant 0 : i32
    %c0_i32_0 = arith.constant 0 : i32
    %c0_i32_1 = arith.constant 0 : i32
    return %c0_i32, %c0_i32_0 : i32, i32
  }
  func.func @transform_6(%arg0: i32) -> (i32, i32) {
    %c0_i32 = arith.constant 0 : i32
    %c0_i32_0 = arith.constant 0 : i32
    %c0_i32_1 = arith.constant 0 : i32
    return %c0_i32, %c0_i32_0 : i32, i32
  }
  func.func @transform_7(%arg0: i32) -> (i32, i32) {
    %c0_i32 = arith.constant 0 : i32
    %c0_i32_0 = arith.constant 0 : i32
    %c0_i32_1 = arith.constant 0 : i32
    return %c0_i32, %c0_i32_0 : i32, i32
  }
  func.func @transform_8(%arg0: i32) -> (i32, i32) {
    %c0_i32 = arith.constant 0 : i32
    %c0_i32_0 = arith.constant 0 : i32
    %c0_i32_1 = arith.constant 0 : i32
    return %c0_i32, %c0_i32_0 : i32, i32
  }
  func.func @transform_9(%arg0: i32) -> (i32, i32) {
    %c0_i32 = arith.constant 0 : i32
    %c0_i32_0 = arith.constant 0 : i32
    return %arg0, %c0_i32 : i32, i32
  }
}

</mosaic_0001>

<bundles_post_ra>
// kernel: tpu_custom_call.1
= control target key start
LH: loop header
LB: loop body
LE: loop exit
PB: predicated region body
PF: predicated region fallthrough
CT: control target
= control target key end

     0   :  { %14 = vsyncpa [#allocation3], 0  ;;  %s780_s0 = inlined_call_operand.hbm [shape: f32[2,8], index: 0, kind: input, shape index: {}]   ;;  %s781_s1 = inlined_call_operand.hbm [shape: bf16[8,128], index: 1, kind: input, shape index: {}]   ;;  %s782_s2 = inlined_call_operand.vmem [shape: f32[1,128], index: 2, kind: input, shape index: {}]   ;;  %s783_s3 = inlined_call_operand.hbm [shape: bf16[128,128], index: 3, kind: input, shape index: {}]   ;;  %s784_s4 = inlined_call_operand.vmem [shape: f32[1,128], index: 4, kind: input, shape index: {}]   ;;  %s785_s5 = inlined_call_operand.hbm [shape: bf16[128,128], index: 5, kind: input, shape index: {}]   ;;  %s786_s6 = inlined_call_operand.vmem [shape: f32[1,128], index: 6, kind: input, shape index: {}]   ;;  %s787_s7 = inlined_call_operand.hbm [shape: bf16[128,128], index: 7, kind: input, shape index: {}]   ;;  %s788_s8 = inlined_call_operand.vmem [shape: f32[1,4], index: 8, kind: input, shape index: {}]   ;;  %s789_s9 = inlined_call_operand.hbm [shape: f32[2,4], index: 9, kind: output, shape index: {}]  }
   0x1   :  { %15 = vsyncpa [#allocation6], 0 }
   0x2   :  { %16 = vsyncpa [#allocation9], 0  ;;  %s34_s11 = sshll.u32 %s781_s1, 4  ;;  %s35_s11 = int_to_ptr.hbm [resolvable:$true] %s34_s11 }
   0x3   :  { %17 = vsyncpa [#allocation4], 0  ;;  %s692_s12 = smov [#allocation5]   ;;  %s61_s16 = sshll.u32 %s785_s5, 4  ;;  %s62_s16 = int_to_ptr.hbm [resolvable:$true] %s61_s16 }
   0x4   :  { %s36_s13 = sshll.u32 %s692_s12, 4  ;;  %s693_s17 = smov [#allocation8]   ;;  %s37_s13 = int_to_ptr.vmem [resolvable:$true] %s36_s13 }
   0x5   :  { %39 = dma.hbm_to_vmem [thread:$0]  %s35_s11, 64, %s37_s13, [#allocation6]  }
   0x6   :  { %s63_s18 = sshll.u32 %s693_s17, 4  ;;  %s23_s21 = sshll.u32 %s780_s0, 4  ;;  %s64_s18 = int_to_ptr.vmem [resolvable:$true] %s63_s18  ;;  %s24_s21 = int_to_ptr.hbm [resolvable:$true] %s23_s21 }
   0x7   :  { %s694_s1 = smov 64   ;;  %s695_s22 = smov 4  }
   0x8   :  { %69 = dma.hbm_to_vmem [thread:$0]  %s62_s16, 1024, %s64_s18, [#allocation9], %s694_s1, %s694_s1, %s695_s22  }
   0x9   :  { %s46_s25 = sshll.u32 %s783_s3, 4  ;;  %s696_s26 = smov [#allocation2]   ;;  %s47_s25 = int_to_ptr.hbm [resolvable:$true] %s46_s25 }
   0xa   :  { %s25_s27 = sshll.u32 %s696_s26, 4  ;;  %s697_s5 = smov [#allocation7]   ;;  %s26_s27 = int_to_ptr.vmem [resolvable:$true] %s25_s27 }
   0xb   :  { %28 = dma.hbm_to_vmem [thread:$0]  %s24_s21, 32, %s26_s27, [#allocation3]  }
   0xc   :  { %s48_s28 = sshll.u32 %s697_s5, 4  ;;  %s76_s0 = sshll.u32 %s787_s7, 4  ;;  %s49_s28 = int_to_ptr.vmem [resolvable:$true] %s48_s28  ;;  %s77_s0 = int_to_ptr.hbm [resolvable:$true] %s76_s0 }
   0xd   :  { %54 = dma.hbm_to_vmem [thread:$0]  %s47_s25, 1024, %s49_s28, [#allocation6], %s694_s1, %s694_s1, %s695_s22  }
   0xe   :  { %s698_s10 = smov [#allocation10]  }
   0xf   :  { %s78_s11 = sshll.u32 %s698_s10, 4  ;;  %s79_s11 = int_to_ptr.vmem [resolvable:$true] %s78_s11 }
  0x10   :  { %84 = dma.hbm_to_vmem [thread:$0]  %s77_s0, 1024, %s79_s11, [#allocation9], %s694_s1, %s694_s1, %s695_s22  }
  0x11   :  { %684 = dma.done.wait [#allocation3], 32  }
  0x12   :  { %685 = vsyncadd [#allocation3], 4294967264 }
  0x13   :  { %686 = dma.done.wait [#allocation6], 1088  }
  0x14   :  { %687 = vsyncadd [#allocation6], 4294966208 }
  0x15   :  { %688 = dma.done.wait [#allocation9], 2048  }
  0x16   :  { %689 = vsyncadd [#allocation9], 4294965248  ;;  %vm119_vm0 = vcmask 1043456   ;;  %v110_v0 = vld [vmem:[#allocation5] sm:$0xf]  ;;  %vm115_vm1 = vcmask 64512  }
  0x17   :  { %v108_v1 = vld [vmem:[#allocation2] sm:$0x3]  ;;  %v121_v3 = vsel %vm119_vm0, %v110_v0, 0  ;;  %v510_v5 = vld [vmem:[#allocation7 + $0x30] sm:$0xff]  ;;  %v509_v6 = vld [vmem:[#allocation7 + $0x28] sm:$0xff]  ;;  %s699_s16 = smov [#allocation11]  }
  0x18   :  { %v511_v2 = vld [vmem:[#allocation7 + $0x38] sm:$0xff]  ;;  %v109_v4 = vpack.c.bf16 %v108_v1, %v108_v1  ;;  %130 = vmatpush.bf16.msra.mxu0 %v121_v3  ;;  %v508_v7 = vld [vmem:[#allocation7 + $0x20] sm:$0xff]  ;;  %v506_v9 = vld [vmem:[#allocation7 + $0x10] sm:$0xff]  ;;  %s393_s17 = sshll.u32 %s699_s16, 4  ;;  %s395_s20 = sshll.u32 %s789_s9, 4  ;;  %vm386_vm2 = vcmask 25600   ;;  %s394_s17 = int_to_ptr.vmem [resolvable:$true] %s393_s17  ;;  %s396_s20 = int_to_ptr.hbm [resolvable:$true] %s395_s20 }
  0x19   :  { %206 = vmatpush.bf16.msra.mxu1 %v511_v2  ;;  %v507_v8 = vld [vmem:[#allocation7 + $0x18] sm:$0xff]  ;;  %v505_v10 = vld [vmem:[#allocation7 + $0x8] sm:$0xff]  ;;  %v504_v11 = vld [vmem:[#allocation7] sm:$0xff] }
  0x1a   :  { %v519_v12 = vld [vmem:[#allocation8 + $0x38] sm:$0xff]  ;;  %v518_v13 = vld [vmem:[#allocation8 + $0x30] sm:$0xff]  ;;  %v517_v14 = vld [vmem:[#allocation8 + $0x28] sm:$0xff] }
  0x1b   :  { %407 = vmatmul.msk.bf16.vlgmr.msra.gmra.mxu0 %vm115_vm1, %v109_v4  ;;  %289 = vmatpush.bf16.msra.mxu2 %v519_v12  ;;  %v516_v15 = vld [vmem:[#allocation8 + $0x20] sm:$0xff]  ;;  %v515_v16 = vld [vmem:[#allocation8 + $0x18] sm:$0xff]  ;;  %v514_v17 = vld [vmem:[#allocation8 + $0x10] sm:$0xff] }
  0x1c   :  { %v536_v18 = vld [vmem:[%s782_s2] ss:$0 sm:$0xff]  ;;  %v513_v24 = vld [vmem:[#allocation8 + $0x8] sm:$0xff]  ;;  %v512_v25 = vld [vmem:[#allocation8] sm:$0xff] }
  0x1d   :  { %207 = vmatpush.bf16.msra.mxu1 %v510_v5  ;;  %v527_v26 = vld [vmem:[#allocation10 + $0x38] sm:$0xff]  ;;  %v526_v27 = vld [vmem:[#allocation10 + $0x30] sm:$0xff]  ;;  %v525_v28 = vld [vmem:[#allocation10 + $0x28] sm:$0xff] }
  0x1e   :  { %368 = vmatpush.bf16.msra.mxu3 %v527_v26  ;;  %v524_v29 = vld [vmem:[#allocation10 + $0x20] sm:$0xff]  ;;  %v523_v30 = vld [vmem:[#allocation10 + $0x18] sm:$0xff]  ;;  %v522_v31 = vld [vmem:[#allocation10 + $0x10] sm:$0xff] }
  0x1f   :  { %290 = vmatpush.bf16.msra.mxu2 %v518_v13  ;;  %v537_v32 = vld [vmem:[%s784_s4] ss:$0 sm:$0xff]  ;;  %v521_v38 = vld [vmem:[#allocation10 + $0x8] sm:$0xff]  ;;  %v520_v39 = vld [vmem:[#allocation10] sm:$0xff] }
  0x20   :  { %v538_v40 = vld [vmem:[%s786_s6] ss:$0 sm:$0xff] }
  0x21   :  { %208 = vmatpush.bf16.msra.mxu1 %v509_v6  ;;  %v539_v46 = vld [vmem:[%s788_s8] ss:$0 sm:$0xff] }
  0x22   :  { %369 = vmatpush.bf16.msra.mxu3 %v526_v27 }
  0x23   :  { %291 = vmatpush.bf16.msra.mxu2 %v517_v14 }
  0x25   :  { %209 = vmatpush.bf16.msra.mxu1 %v508_v7 }
  0x26   :  { %370 = vmatpush.bf16.msra.mxu3 %v525_v28 }
  0x27   :  { %292 = vmatpush.bf16.msra.mxu2 %v516_v15 }
  0x29   :  { %210 = vmatpush.bf16.msra.mxu1 %v507_v8 }
  0x2a   :  { %371 = vmatpush.bf16.msra.mxu3 %v524_v29 }
  0x2b   :  { %293 = vmatpush.bf16.msra.mxu2 %v515_v16 }
  0x2d   :  { %211 = vmatpush.bf16.msra.mxu1 %v506_v9 }
  0x2e   :  { %372 = vmatpush.bf16.msra.mxu3 %v523_v30 }
  0x2f   :  { %294 = vmatpush.bf16.msra.mxu2 %v514_v17 }
  0x31   :  { %212 = vmatpush.bf16.msra.mxu1 %v505_v10 }
  0x32   :  { %373 = vmatpush.bf16.msra.mxu3 %v522_v31 }
  0x33   :  { %295 = vmatpush.bf16.msra.mxu2 %v513_v24 }
  0x35   :  { %213 = vmatpush.bf16.msra.mxu1 %v504_v11 }
  0x36   :  { %374 = vmatpush.bf16.msra.mxu3 %v521_v38 }
  0x37   :  { %296 = vmatpush.bf16.msra.mxu2 %v512_v25 }
  0x3a   :  { %375 = vmatpush.bf16.msra.mxu3 %v520_v39 }
  0x98   :  { %v132_v19 = vpop.f32.mrf.mxu0 }
  0x99   :  { %v133_v20 = vadd.f32 %v536_v18, %v132_v19 }
  0x9b   :  { %v136_v21 = vmax.f32 %v133_v20, 0.0 }
  0x9d   :  { %v137_v22 = vpack.c.bf16 %v136_v21, %v136_v21 }
  0x9f   :  { %214 = vmatmul.bf16.vlgmr.msra.gmra.mxu1 %v137_v22 }
  0xa0   :  { %v134_v23 = vpop.f32.mrf.mxu0 }
 0x11c   :  { %v215_v33 = vpop.f32.mrf.mxu1 }
 0x11d   :  { %v216_v34 = vadd.f32 %v537_v32, %v215_v33 }
 0x11f   :  { %v219_v35 = vmax.f32 %v216_v34, 0.0 }
 0x121   :  { %v220_v36 = vpack.c.bf16 %v219_v35, %v219_v35 }
 0x123   :  { %297 = vmatmul.bf16.vlgmr.msra.gmra.mxu2 %v220_v36 }
 0x124   :  { %v217_v37 = vpop.f32.mrf.mxu1 }
 0x1a6   :  { %v298_v41 = vpop.f32.mrf.mxu2 }
 0x1a7   :  { %v299_v42 = vadd.f32 %v538_v40, %v298_v41 }
 0x1a9   :  { %v302_v43 = vmax.f32 %v299_v42, 0.0 }
 0x1ab   :  { %v303_v44 = vpack.c.bf16 %v302_v43, %v302_v43 }
 0x1ad   :  { %376 = vmatmul.bf16.vlgmr.msra.gmra.mxu3 %v303_v44 }
 0x1ae   :  { %v300_v45 = vpop.f32.mrf.mxu2 }
 0x230   :  { %v377_v47 = vpop.f32.mrf.mxu3 }
 0x231   :  { %v385_v48 = vadd.f32 %v539_v46, %v377_v47 }
 0x233   :  { %387 = vst.msk [vmem:[#allocation11] sm:$0x3] %vm386_vm2, %v385_v48 }
 0x234   :  { %398 = dma.vmem_to_hbm [thread:$0]  %s394_s17, 32, %s396_s20, [#allocation4]  }
 0x238   :  { %v379_v49 = vpop.f32.mrf.mxu3 }
 0x239   :  { %690 = dma.done.wait [#allocation4], 32  }
 0x23a   :  { %691 = vsyncadd [#allocation4], 4294967264 }
 0x23b   :  { %403 = vsyncpa [#allocation3], 1 }
 0x23c   :  { %404 = vsyncpa [#allocation6], 1 }
 0x23d   :  { %405 = vsyncpa [#allocation9], 1 }
 0x23e   :  { %406 = vsyncpa [#allocation4], 1 }

// kernel: tpu_custom_call.1
= control target key start
LH: loop header
LB: loop body
LE: loop exit
PB: predicated region body
PF: predicated region fallthrough
CT: control target
= control target key end

     0   :  { %14 = vsyncpa [#allocation3], 0  ;;  %s780_s0 = inlined_call_operand.hbm [shape: f32[2,8], index: 0, kind: input, shape index: {}]   ;;  %s781_s1 = inlined_call_operand.hbm [shape: bf16[8,128], index: 1, kind: input, shape index: {}]   ;;  %s782_s2 = inlined_call_operand.vmem [shape: f32[1,128], index: 2, kind: input, shape index: {}]   ;;  %s783_s3 = inlined_call_operand.hbm [shape: bf16[128,128], index: 3, kind: input, shape index: {}]   ;;  %s784_s4 = inlined_call_operand.vmem [shape: f32[1,128], index: 4, kind: input, shape index: {}]   ;;  %s785_s5 = inlined_call_operand.hbm [shape: bf16[128,128], index: 5, kind: input, shape index: {}]   ;;  %s786_s6 = inlined_call_operand.vmem [shape: f32[1,128], index: 6, kind: input, shape index: {}]   ;;  %s787_s7 = inlined_call_operand.hbm [shape: bf16[128,128], index: 7, kind: input, shape index: {}]   ;;  %s788_s8 = inlined_call_operand.vmem [shape: f32[1,4], index: 8, kind: input, shape index: {}]   ;;  %s789_s9 = inlined_call_operand.hbm [shape: f32[2,4], index: 9, kind: output, shape index: {}]  }
   0x1   :  { %15 = vsyncpa [#allocation6], 0 }
   0x2   :  { %16 = vsyncpa [#allocation9], 0  ;;  %s34_s11 = sshll.u32 %s781_s1, 4  ;;  %s35_s11 = int_to_ptr.hbm [resolvable:$true] %s34_s11 }
   0x3   :  { %17 = vsyncpa [#allocation4], 0  ;;  %s692_s12 = smov [#allocation5]   ;;  %s61_s16 = sshll.u32 %s785_s5, 4  ;;  %s62_s16 = int_to_ptr.hbm [resolvable:$true] %s61_s16 }
   0x4   :  { %s36_s13 = sshll.u32 %s692_s12, 4  ;;  %s693_s17 = smov [#allocation8]   ;;  %s37_s13 = int_to_ptr.vmem [resolvable:$true] %s36_s13 }
   0x5   :  { %39 = dma.hbm_to_vmem [thread:$0]  %s35_s11, 64, %s37_s13, [#allocation6]  }
   0x6   :  { %s63_s18 = sshll.u32 %s693_s17, 4  ;;  %s23_s21 = sshll.u32 %s780_s0, 4  ;;  %s64_s18 = int_to_ptr.vmem [resolvable:$true] %s63_s18  ;;  %s24_s21 = int_to_ptr.hbm [resolvable:$true] %s23_s21 }
   0x7   :  { %s694_s1 = smov 64   ;;  %s695_s22 = smov 4  }
   0x8   :  { %69 = dma.hbm_to_vmem [thread:$0]  %s62_s16, 1024, %s64_s18, [#allocation9], %s694_s1, %s694_s1, %s695_s22  }
   0x9   :  { %s46_s25 = sshll.u32 %s783_s3, 4  ;;  %s696_s26 = smov [#allocation2]   ;;  %s47_s25 = int_to_ptr.hbm [resolvable:$true] %s46_s25 }
   0xa   :  { %s25_s27 = sshll.u32 %s696_s26, 4  ;;  %s697_s5 = smov [#allocation7]   ;;  %s26_s27 = int_to_ptr.vmem [resolvable:$true] %s25_s27 }
   0xb   :  { %28 = dma.hbm_to_vmem [thread:$0]  %s24_s21, 32, %s26_s27, [#allocation3]  }
   0xc   :  { %s48_s28 = sshll.u32 %s697_s5, 4  ;;  %s76_s0 = sshll.u32 %s787_s7, 4  ;;  %s49_s28 = int_to_ptr.vmem [resolvable:$true] %s48_s28  ;;  %s77_s0 = int_to_ptr.hbm [resolvable:$true] %s76_s0 }
   0xd   :  { %54 = dma.hbm_to_vmem [thread:$0]  %s47_s25, 1024, %s49_s28, [#allocation6], %s694_s1, %s694_s1, %s695_s22  }
   0xe   :  { %s698_s10 = smov [#allocation10]  }
   0xf   :  { %s78_s11 = sshll.u32 %s698_s10, 4  ;;  %s79_s11 = int_to_ptr.vmem [resolvable:$true] %s78_s11 }
  0x10   :  { %84 = dma.hbm_to_vmem [thread:$0]  %s77_s0, 1024, %s79_s11, [#allocation9], %s694_s1, %s694_s1, %s695_s22  }
  0x11   :  { %684 = dma.done.wait [#allocation3], 32  }
  0x12   :  { %685 = vsyncadd [#allocation3], 4294967264 }
  0x13   :  { %686 = dma.done.wait [#allocation6], 1088  }
  0x14   :  { %687 = vsyncadd [#allocation6], 4294966208 }
  0x15   :  { %688 = dma.done.wait [#allocation9], 2048  }
  0x16   :  { %689 = vsyncadd [#allocation9], 4294965248  ;;  %vm119_vm0 = vcmask 1043456   ;;  %v110_v0 = vld [vmem:[#allocation5] sm:$0xf]  ;;  %vm115_vm1 = vcmask 64512  }
  0x17   :  { %v108_v1 = vld [vmem:[#allocation2] sm:$0x3]  ;;  %v121_v3 = vsel %vm119_vm0, %v110_v0, 0  ;;  %v510_v5 = vld [vmem:[#allocation7 + $0x30] sm:$0xff]  ;;  %v509_v6 = vld [vmem:[#allocation7 + $0x28] sm:$0xff]  ;;  %s699_s16 = smov [#allocation11]  }
  0x18   :  { %v511_v2 = vld [vmem:[#allocation7 + $0x38] sm:$0xff]  ;;  %v109_v4 = vpack.c.bf16 %v108_v1, %v108_v1  ;;  %130 = vmatpush.bf16.msra.mxu0 %v121_v3  ;;  %v508_v7 = vld [vmem:[#allocation7 + $0x20] sm:$0xff]  ;;  %v506_v9 = vld [vmem:[#allocation7 + $0x10] sm:$0xff]  ;;  %s393_s17 = sshll.u32 %s699_s16, 4  ;;  %s395_s20 = sshll.u32 %s789_s9, 4  ;;  %vm386_vm2 = vcmask 25600   ;;  %s394_s17 = int_to_ptr.vmem [resolvable:$true] %s393_s17  ;;  %s396_s20 = int_to_ptr.hbm [resolvable:$true] %s395_s20 }
  0x19   :  { %206 = vmatpush.bf16.msra.mxu1 %v511_v2  ;;  %v507_v8 = vld [vmem:[#allocation7 + $0x18] sm:$0xff]  ;;  %v505_v10 = vld [vmem:[#allocation7 + $0x8] sm:$0xff]  ;;  %v504_v11 = vld [vmem:[#allocation7] sm:$0xff] }
  0x1a   :  { %v519_v12 = vld [vmem:[#allocation8 + $0x38] sm:$0xff]  ;;  %v518_v13 = vld [vmem:[#allocation8 + $0x30] sm:$0xff]  ;;  %v517_v14 = vld [vmem:[#allocation8 + $0x28] sm:$0xff] }
  0x1b   :  { %407 = vmatmul.msk.bf16.vlgmr.msra.gmra.mxu0 %vm115_vm1, %v109_v4  ;;  %289 = vmatpush.bf16.msra.mxu2 %v519_v12  ;;  %v516_v15 = vld [vmem:[#allocation8 + $0x20] sm:$0xff]  ;;  %v515_v16 = vld [vmem:[#allocation8 + $0x18] sm:$0xff]  ;;  %v514_v17 = vld [vmem:[#allocation8 + $0x10] sm:$0xff] }
  0x1c   :  { %v536_v18 = vld [vmem:[%s782_s2] ss:$0 sm:$0xff]  ;;  %v513_v24 = vld [vmem:[#allocation8 + $0x8] sm:$0xff]  ;;  %v512_v25 = vld [vmem:[#allocation8] sm:$0xff] }
  0x1d   :  { %207 = vmatpush.bf16.msra.mxu1 %v510_v5  ;;  %v527_v26 = vld [vmem:[#allocation10 + $0x38] sm:$0xff]  ;;  %v526_v27 = vld [vmem:[#allocation10 + $0x30] sm:$0xff]  ;;  %v525_v28 = vld [vmem:[#allocation10 + $0x28] sm:$0xff] }
  0x1e   :  { %368 = vmatpush.bf16.msra.mxu3 %v527_v26  ;;  %v524_v29 = vld [vmem:[#allocation10 + $0x20] sm:$0xff]  ;;  %v523_v30 = vld [vmem:[#allocation10 + $0x18] sm:$0xff]  ;;  %v522_v31 = vld [vmem:[#allocation10 + $0x10] sm:$0xff] }
  0x1f   :  { %290 = vmatpush.bf16.msra.mxu2 %v518_v13  ;;  %v537_v32 = vld [vmem:[%s784_s4] ss:$0 sm:$0xff]  ;;  %v521_v38 = vld [vmem:[#allocation10 + $0x8] sm:$0xff]  ;;  %v520_v39 = vld [vmem:[#allocation10] sm:$0xff] }
  0x20   :  { %v538_v40 = vld [vmem:[%s786_s6] ss:$0 sm:$0xff] }
  0x21   :  { %208 = vmatpush.bf16.msra.mxu1 %v509_v6  ;;  %v539_v46 = vld [vmem:[%s788_s8] ss:$0 sm:$0xff] }
  0x22   :  { %369 = vmatpush.bf16.msra.mxu3 %v526_v27 }
  0x23   :  { %291 = vmatpush.bf16.msra.mxu2 %v517_v14 }
  0x25   :  { %209 = vmatpush.bf16.msra.mxu1 %v508_v7 }
  0x26   :  { %370 = vmatpush.bf16.msra.mxu3 %v525_v28 }
  0x27   :  { %292 = vmatpush.bf16.msra.mxu2 %v516_v15 }
  0x29   :  { %210 = vmatpush.bf16.msra.mxu1 %v507_v8 }
  0x2a   :  { %371 = vmatpush.bf16.msra.mxu3 %v524_v29 }
  0x2b   :  { %293 = vmatpush.bf16.msra.mxu2 %v515_v16 }
  0x2d   :  { %211 = vmatpush.bf16.msra.mxu1 %v506_v9 }
  0x2e   :  { %372 = vmatpush.bf16.msra.mxu3 %v523_v30 }
  0x2f   :  { %294 = vmatpush.bf16.msra.mxu2 %v514_v17 }
  0x31   :  { %212 = vmatpush.bf16.msra.mxu1 %v505_v10 }
  0x32   :  { %373 = vmatpush.bf16.msra.mxu3 %v522_v31 }
  0x33   :  { %295 = vmatpush.bf16.msra.mxu2 %v513_v24 }
  0x35   :  { %213 = vmatpush.bf16.msra.mxu1 %v504_v11 }
  0x36   :  { %374 = vmatpush.bf16.msra.mxu3 %v521_v38 }
  0x37   :  { %296 = vmatpush.bf16.msra.mxu2 %v512_v25 }
  0x3a   :  { %375 = vmatpush.bf16.msra.mxu3 %v520_v39 }
  0x98   :  { %v132_v19 = vpop.f32.mrf.mxu0 }
  0x99   :  { %v133_v20 = vadd.f32 %v536_v18, %v132_v19 }
  0x9b   :  { %v136_v21 = vmax.f32 %v133_v20, 0.0 }
  0x9d   :  { %v137_v22 = vpack.c.bf16 %v136_v21, %v136_v21 }
  0x9f   :  { %214 = vmatmul.bf16.vlgmr.msra.gmra.mxu1 %v137_v22 }
  0xa0   :  { %v134_v23 = vpop.f32.mrf.mxu0 }
 0x11c   :  { %v215_v33 = vpop.f32.mrf.mxu1 }
 0x11d   :  { %v216_v34 = vadd.f32 %v537_v32, %v215_v33 }
 0x11f   :  { %v219_v35 = vmax.f32 %v216_v34, 0.0 }
 0x121   :  { %v220_v36 = vpack.c.bf16 %v219_v35, %v219_v35 }
 0x123   :  { %297 = vmatmul.bf16.vlgmr.msra.gmra.mxu2 %v220_v36 }
 0x124   :  { %v217_v37 = vpop.f32.mrf.mxu1 }
 0x1a6   :  { %v298_v41 = vpop.f32.mrf.mxu2 }
 0x1a7   :  { %v299_v42 = vadd.f32 %v538_v40, %v298_v41 }
 0x1a9   :  { %v302_v43 = vmax.f32 %v299_v42, 0.0 }
 0x1ab   :  { %v303_v44 = vpack.c.bf16 %v302_v43, %v302_v43 }
 0x1ad   :  { %376 = vmatmul.bf16.vlgmr.msra.gmra.mxu3 %v303_v44 }
 0x1ae   :  { %v300_v45 = vpop.f32.mrf.mxu2 }
 0x230   :  { %v377_v47 = vpop.f32.mrf.mxu3 }
 0x231   :  { %v385_v48 = vadd.f32 %v539_v46, %v377_v47 }
 0x233   :  { %387 = vst.msk [vmem:[#allocation11] sm:$0x3] %vm386_vm2, %v385_v48 }
 0x234   :  { %398 = dma.vmem_to_hbm [thread:$0]  %s394_s17, 32, %s396_s20, [#allocation4]  }
 0x238   :  { %v379_v49 = vpop.f32.mrf.mxu3 }
 0x239   :  { %690 = dma.done.wait [#allocation4], 32  }
 0x23a   :  { %691 = vsyncadd [#allocation4], 4294967264 }
 0x23b   :  { %403 = vsyncpa [#allocation3], 1 }
 0x23c   :  { %404 = vsyncpa [#allocation6], 1 }
 0x23d   :  { %405 = vsyncpa [#allocation9], 1 }
 0x23e   :  { %406 = vsyncpa [#allocation4], 1 }

</bundles_post_ra>
